<compile_context>
chip_gen: v7x
topology: tpu7x:2x2x1
jax: 0.10.0
libtpu: 0.0.40
codegen_flags: <defaults>
</compile_context>

<pallas_src>
import functools

import jax
import jax.numpy as jnp
from jax.experimental import pallas as pl
from jax.experimental.pallas import tpu as pltpu


def _round_up(x, m):
    return (x + m - 1) // m * m


def _choose_batch_tile(batch, block_batch):
    """Batch tile: multiple of 8, <= block_batch, and small enough that the grid
    has >= 2 roughly equal tiles when batch > 8 (v7x megacore split)."""
    if batch <= 8:
        return batch  # single block; second-minor dim == full array dim is legal
    half = _round_up(pl.cdiv(batch, 2), 8)
    return min(max(8, _round_up(block_batch, 8)), half)


def actor_kernel(x_ref, w1_ref, b1_ref, w2_ref, b2_ref, w3_ref, b3_ref, out_ref,
                 *, precision):
    # In-kernel cast of the activations to the MXU operand dtype (VPU has slack;
    # avoids a separate wrapper-side HBM cast pass). No-op on the f32 path.
    x = x_ref[...].astype(w1_ref.dtype)
    # fc1 + ReLU (MXU matmul, f32 accumulate, f32 bias/ReLU).
    h1 = jnp.dot(x, w1_ref[...], preferred_element_type=jnp.float32,
                 precision=precision)
    h1 = jnp.maximum(h1 + b1_ref[...], 0.0)
    # fc2 + ReLU
    h2 = jnp.dot(h1.astype(w2_ref.dtype), w2_ref[...],
                 preferred_element_type=jnp.float32, precision=precision)
    h2 = jnp.maximum(h2 + b2_ref[...], 0.0)
    # fc3 (logits, no activation); output block is [tb, action_size] (no padding).
    logits = jnp.dot(h2.astype(w3_ref.dtype), w3_ref[...],
                     preferred_element_type=jnp.float32, precision=precision)
    out_ref[...] = (logits + b3_ref[...]).astype(out_ref.dtype)


def _resident(shape):
    # Block == full array, block index constant -> stays in VMEM across grid steps.
    return pl.BlockSpec(shape, lambda i: (0, 0))


@functools.partial(jax.jit, static_argnames=("block_batch",))
def actor_forward(x, params, *, block_batch=1024):
    """x: [batch, state_size] float32. params: dict of pre-transposed weights/biases
    (weights may be f32 or bf16; biases f32). Returns [batch, action_size] f32 logits,
    same semantics as the PyTorch Actor."""
    w1, b1, w2, b2, w3, b3 = (params["w1"], params["b1"], params["w2"],
                              params["b2"], params["w3"], params["b3"])
    batch, state_size = x.shape
    action_size = w3.shape[1]

    tb = _choose_batch_tile(batch, block_batch)
    grid = (pl.cdiv(batch, tb),)  # ragged last block is masked by Pallas

    # f32 weights -> HIGHEST precision (multi-pass, matches PyTorch f32 closely);
    # bf16 weights -> native single-pass bf16 MXU with f32 accumulation.
    prec = (jax.lax.Precision.HIGHEST if w1.dtype == jnp.float32
            else jax.lax.Precision.DEFAULT)
    kernel = functools.partial(actor_kernel, precision=prec)

    out = pl.pallas_call(
        kernel,
        out_shape=jax.ShapeDtypeStruct((batch, action_size), jnp.float32),
        grid=grid,
        in_specs=[
            pl.BlockSpec((tb, state_size), lambda i: (i, 0)),   # x: tiled over batch
            _resident(w1.shape), _resident(b1.shape),
            _resident(w2.shape), _resident(b2.shape),
            _resident(w3.shape), _resident(b3.shape),
        ],
        out_specs=pl.BlockSpec((tb, action_size), lambda i: (i, 0)),
        compiler_params=pltpu.CompilerParams(
            dimension_semantics=("parallel",)),                 # megacore split on v7x
    )(x, w1, b1, w2, b2, w3, b3)

    return out


def cast_params_for_mxu(params, dtype=jnp.bfloat16):
    """One-time weight cast to the MXU fast-path dtype (do this once at init, not per
    forward). Biases stay f32: they are added on the f32 accumulator/ReLU path."""
    out = dict(params)
    for k in ("w1", "w2", "w3"):
        out[k] = params[k].astype(dtype)
    return out


def init_actor_params(key, state_size, action_size, hidden_size=64):
    """Deterministic init mimicking nn.Linear default (uniform +/- 1/sqrt(fan_in)).
    Weights are returned pre-transposed as [in, out]; biases as [1, out]."""
    ks = jax.random.split(key, 6)

    def linear(kw, kb, fan_in, fan_out):
        bound = 1.0 / jnp.sqrt(fan_in)
        w = jax.random.uniform(kw, (fan_in, fan_out), jnp.float32, -bound, bound)
        b = jax.random.uniform(kb, (1, fan_out), jnp.float32, -bound, bound)
        return w, b

    w1, b1 = linear(ks[0], ks[1], state_size, hidden_size)
    w2, b2 = linear(ks[2], ks[3], hidden_size, hidden_size)
    w3, b3 = linear(ks[4], ks[5], hidden_size, action_size)
    return {"w1": w1, "b1": b1, "w2": w2, "b2": b2, "w3": w3, "b3": b3}


def actor_forward_ref(x, params):
    prec = jax.lax.Precision.HIGHEST
    w1 = params["w1"].astype(jnp.float32)
    w2 = params["w2"].astype(jnp.float32)
    w3 = params["w3"].astype(jnp.float32)
    h1 = jax.nn.relu(jnp.dot(x, w1, precision=prec) + params["b1"])
    h2 = jax.nn.relu(jnp.dot(h1, w2, precision=prec) + params["b2"])
    return jnp.dot(h2, w3, precision=prec) + params["b3"]


if __name__ == "__main__":
    key = jax.random.PRNGKey(0)
    k_params, k_x, k_xl = jax.random.split(key, 3)

    batch, state_size, action_size, hidden_size = 8, 16, 4, 64
    params = init_actor_params(k_params, state_size, action_size, hidden_size)

    # Small case (single tile), f32 path with HIGHEST-precision dots — tight match.
    x = jax.random.normal(k_x, (batch, state_size), jnp.float32)
    logits = actor_forward(x, params)
    jax.block_until_ready(logits)
    ref = actor_forward_ref(x, params)
    assert logits.shape == (batch, action_size)
    assert jnp.allclose(logits, ref, atol=1e-5, rtol=1e-5)

    # Larger, non-tile-aligned batch (ragged last block, 2 balanced tiles for
    # megacore), bf16 MXU operands pre-cast once; f32 accumulate/bias/ReLU.
    xl = jax.random.normal(k_xl, (300, state_size), jnp.float32)
    ref_l = actor_forward_ref(xl, params)

    params_bf16 = cast_params_for_mxu(params)
    logits_bf16 = actor_forward(xl, params_bf16)
    jax.block_until_ready(logits_bf16)
    assert logits_bf16.shape == (300, action_size)
    assert jnp.allclose(logits_bf16, ref_l, atol=1e-1, rtol=5e-2)

    # Same ragged batch on the exact f32 path (tight tolerance).
    logits_f32 = actor_forward(xl, params)
    jax.block_until_ready(logits_f32)
    assert logits_f32.shape == (300, action_size)
    assert jnp.allclose(logits_f32, ref_l, atol=1e-5, rtol=1e-5)

    print("KERNEL_OK")
</pallas_src>

<mosaic_0001>
module attributes {stable_mosaic.version = 11 : i64} {
  func.func @actor_kernel(%arg0: i32, %arg1: memref<8x16xf32, #tpu.memory_space<vmem>>, %arg2: memref<16x64xf32, #tpu.memory_space<vmem>>, %arg3: memref<1x64xf32, #tpu.memory_space<vmem>>, %arg4: memref<64x64xf32, #tpu.memory_space<vmem>>, %arg5: memref<1x64xf32, #tpu.memory_space<vmem>>, %arg6: memref<64x4xf32, #tpu.memory_space<vmem>>, %arg7: memref<1x4xf32, #tpu.memory_space<vmem>>, %arg8: memref<8x4xf32, #tpu.memory_space<vmem>>) attributes {dimension_semantics = [#tpu.dimension_semantics<parallel>], iteration_bounds = array<i64: 1>, scalar_prefetch = 0 : i64, scratch_operands = 0 : i64, tpu.core_type = #tpu.core_type<tc>, window_params = [{transform_indices = @transform_0, window_bounds = array<i64: 8, 16>}, {pipeline_mode = #tpu.pipeline_mode<synchronous>, transform_indices = @transform_1, window_bounds = array<i64: 16, 64>}, {pipeline_mode = #tpu.pipeline_mode<synchronous>, transform_indices = @transform_2, window_bounds = array<i64: 1, 64>}, {pipeline_mode = #tpu.pipeline_mode<synchronous>, transform_indices = @transform_3, window_bounds = array<i64: 64, 64>}, {pipeline_mode = #tpu.pipeline_mode<synchronous>, transform_indices = @transform_4, window_bounds = array<i64: 1, 64>}, {pipeline_mode = #tpu.pipeline_mode<synchronous>, transform_indices = @transform_5, window_bounds = array<i64: 64, 4>}, {pipeline_mode = #tpu.pipeline_mode<synchronous>, transform_indices = @transform_6, window_bounds = array<i64: 1, 4>}, {transform_indices = @transform_7, window_bounds = array<i64: 8, 4>}]} {
    %c0 = arith.constant 0 : index
    %c0_0 = arith.constant 0 : index
    %0 = vector.load %arg1[%c0, %c0_0] : memref<8x16xf32, #tpu.memory_space<vmem>>, vector<8x16xf32>
    %c0_1 = arith.constant 0 : index
    %c0_2 = arith.constant 0 : index
    %1 = vector.load %arg2[%c0_1, %c0_2] : memref<16x64xf32, #tpu.memory_space<vmem>>, vector<16x64xf32>
    %cst = arith.constant dense<0.000000e+00> : vector<8x64xf32>
    %2 = tpu.matmul %0, %1, %cst {dimension_numbers = #tpu.dot_dimension_numbers<[1], [0], [0], [1], [0, 0, 1, 1], [], []>, precision = #tpu.contract_precision<fp32>} : vector<8x16xf32>, vector<16x64xf32>, vector<8x64xf32> -> vector<8x64xf32>
    %c0_3 = arith.constant 0 : index
    %c0_4 = arith.constant 0 : index
    %3 = vector.load %arg3[%c0_3, %c0_4] : memref<1x64xf32, #tpu.memory_space<vmem>>, vector<1x64xf32>
    %4 = vector.broadcast %3 : vector<1x64xf32> to vector<8x64xf32>
    %5 = arith.addf %2, %4 : vector<8x64xf32>
    %cst_5 = arith.constant 0.000000e+00 : f32
    %6 = vector.broadcast %cst_5 : f32 to vector<8x64xf32>
    %7 = arith.maximumf %5, %6 : vector<8x64xf32>
    %c0_6 = arith.constant 0 : index
    %c0_7 = arith.constant 0 : index
    %8 = vector.load %arg4[%c0_6, %c0_7] : memref<64x64xf32, #tpu.memory_space<vmem>>, vector<64x64xf32>
    %cst_8 = arith.constant dense<0.000000e+00> : vector<8x64xf32>
    %9 = tpu.matmul %7, %8, %cst_8 {dimension_numbers = #tpu.dot_dimension_numbers<[1], [0], [0], [1], [0, 0, 1, 1], [], []>, precision = #tpu.contract_precision<fp32>} : vector<8x64xf32>, vector<64x64xf32>, vector<8x64xf32> -> vector<8x64xf32>
    %c0_9 = arith.constant 0 : index
    %c0_10 = arith.constant 0 : index
    %10 = vector.load %arg5[%c0_9, %c0_10] : memref<1x64xf32, #tpu.memory_space<vmem>>, vector<1x64xf32>
    %11 = vector.broadcast %10 : vector<1x64xf32> to vector<8x64xf32>
    %12 = arith.addf %9, %11 : vector<8x64xf32>
    %cst_11 = arith.constant 0.000000e+00 : f32
    %13 = vector.broadcast %cst_11 : f32 to vector<8x64xf32>
    %14 = arith.maximumf %12, %13 : vector<8x64xf32>
    %c0_12 = arith.constant 0 : index
    %c0_13 = arith.constant 0 : index
    %15 = vector.load %arg6[%c0_12, %c0_13] : memref<64x4xf32, #tpu.memory_space<vmem>>, vector<64x4xf32>
    %cst_14 = arith.constant dense<0.000000e+00> : vector<8x4xf32>
    %16 = tpu.matmul %14, %15, %cst_14 {dimension_numbers = #tpu.dot_dimension_numbers<[1], [0], [0], [1], [0, 0, 1, 1], [], []>, precision = #tpu.contract_precision<fp32>} : vector<8x64xf32>, vector<64x4xf32>, vector<8x4xf32> -> vector<8x4xf32>
    %c0_15 = arith.constant 0 : index
    %c0_16 = arith.constant 0 : index
    %17 = vector.load %arg7[%c0_15, %c0_16] : memref<1x4xf32, #tpu.memory_space<vmem>>, vector<1x4xf32>
    %18 = vector.broadcast %17 : vector<1x4xf32> to vector<8x4xf32>
    %19 = arith.addf %16, %18 : vector<8x4xf32>
    %c0_17 = arith.constant 0 : index
    %c0_18 = arith.constant 0 : index
    %20 = vector.load %arg8[%c0_17, %c0_18] : memref<8x4xf32, #tpu.memory_space<vmem>>, vector<8x4xf32>
    tpu.vector_store %arg8[%c0_17, %c0_18], %19 {strides = array<i32>} : memref<8x4xf32, #tpu.memory_space<vmem>>, vector<8x4xf32>,
    return
  }
  func.func @transform_0(%arg0: i32) -> (i32, i32) {
    %c0_i32 = arith.constant 0 : i32
    %c0_i32_0 = arith.constant 0 : i32
    return %arg0, %c0_i32 : i32, i32
  }
  func.func @transform_1(%arg0: i32) -> (i32, i32) {
    %c0_i32 = arith.constant 0 : i32
    %c0_i32_0 = arith.constant 0 : i32
    %c0_i32_1 = arith.constant 0 : i32
    return %c0_i32, %c0_i32_0 : i32, i32
  }
  func.func @transform_2(%arg0: i32) -> (i32, i32) {
    %c0_i32 = arith.constant 0 : i32
    %c0_i32_0 = arith.constant 0 : i32
    %c0_i32_1 = arith.constant 0 : i32
    return %c0_i32, %c0_i32_0 : i32, i32
  }
  func.func @transform_3(%arg0: i32) -> (i32, i32) {
    %c0_i32 = arith.constant 0 : i32
    %c0_i32_0 = arith.constant 0 : i32
    %c0_i32_1 = arith.constant 0 : i32
    return %c0_i32, %c0_i32_0 : i32, i32
  }
  func.func @transform_4(%arg0: i32) -> (i32, i32) {
    %c0_i32 = arith.constant 0 : i32
    %c0_i32_0 = arith.constant 0 : i32
    %c0_i32_1 = arith.constant 0 : i32
    return %c0_i32, %c0_i32_0 : i32, i32
  }
  func.func @transform_5(%arg0: i32) -> (i32, i32) {
    %c0_i32 = arith.constant 0 : i32
    %c0_i32_0 = arith.constant 0 : i32
    %c0_i32_1 = arith.constant 0 : i32
    return %c0_i32, %c0_i32_0 : i32, i32
  }
  func.func @transform_6(%arg0: i32) -> (i32, i32) {
    %c0_i32 = arith.constant 0 : i32
    %c0_i32_0 = arith.constant 0 : i32
    %c0_i32_1 = arith.constant 0 : i32
    return %c0_i32, %c0_i32_0 : i32, i32
  }
  func.func @transform_7(%arg0: i32) -> (i32, i32) {
    %c0_i32 = arith.constant 0 : i32
    %c0_i32_0 = arith.constant 0 : i32
    return %arg0, %c0_i32 : i32, i32
  }
}

</mosaic_0001>

<bundles_post_ra>
// kernel: actor_forward.1
= control target key start
LH: loop header
LB: loop body
LE: loop exit
PB: predicated region body
PF: predicated region fallthrough
CT: control target
= control target key end

     0   :  { %12 = vsyncpa [#allocation3], 0  ;;  %s2252_s24 = smov [#allocation2]   ;;  %s2628_s0 = inlined_call_operand.hbm [shape: f32[8,16], index: 0, kind: input, shape index: {}]   ;;  %s2629_s1 = inlined_call_operand.vmem [shape: f32[16,64], index: 1, kind: input, shape index: {}]   ;;  %s2630_s2 = inlined_call_operand.vmem [shape: f32[1,64], index: 2, kind: input, shape index: {}]   ;;  %s2631_s3 = inlined_call_operand.vmem [shape: f32[64,64], index: 3, kind: input, shape index: {}]   ;;  %s2632_s4 = inlined_call_operand.vmem [shape: f32[1,64], index: 4, kind: input, shape index: {}]   ;;  %s2633_s5 = inlined_call_operand.vmem [shape: f32[64,4], index: 5, kind: input, shape index: {}]   ;;  %s2634_s6 = inlined_call_operand.vmem [shape: f32[1,4], index: 6, kind: input, shape index: {}]   ;;  %s2635_s7 = inlined_call_operand.vmem [shape: f32[8,4], index: 7, kind: output, shape index: {}]  }
   0x1   :  { %s19_s25 = sshll.u32 %s2252_s24, 4  ;;  %s2228_s28 = scalar_lea.hbm %s2628_s0, 128  ;;  %s20_s25 = int_to_ptr.vmem [resolvable:$true] %s19_s25 }
   0x2   :  { %p2229_p0 = scmp.ne.s32.totalorder %s2628_s0, %s2228_s28  ;;  %p2232_p1 = scmp.lt.u32.totalorder %s2228_s28, %s2628_s0 }
   0x4   :  { %p2234_p2 = pnand %p2232_p1, %p2229_p0 }
   0x6   :  { %2237 = shalt.err (!%p2234_p2)
}
   0x7   :  { %s2238_s10 = scalar_lea.vmem %s20_s25, 128  ;;  %p2243_p4 = scmp.lt.s32.totalorder %s20_s25, %s20_s25 }
   0x8   :  { %p2239_p3 = scmp.ne.s32.totalorder %s20_s25, %s2238_s10  ;;  %p2244_p5 = scmp.lt.s32.totalorder %s2238_s10, %s2238_s10 }
   0xa   :  { %p2245_p6 = por %p2244_p5, %p2243_p4 }
   0xc   :  { %p2246_p7 = pnand %p2245_p6, %p2239_p3 }
   0xe   :  { %2249 = shalt.err (!%p2246_p7)
}
   0xf   :  { %22 = dma.hbm_to_vmem [thread:$0]  %s2628_s0, 128, %s20_s25, [#allocation3]  }
  0x10   :  { %2250 = dma.done.wait [#allocation3], 128  }
  0x11   :  { %2251 = vsyncadd [#allocation3], 4294967168  ;;  %v2253_v0 = vmov 0.0|0.0   ;;  %vm2254_vm0 = vmmov 0   ;;  %v2255_v1 = vmov 0.0   ;;  %vm48_vm1 = vcmask 130048  }
  0x12   :  { %2030 = vmatprep.subr.bf16.mxu0 %v2253_v0  ;;  %1764 = vmatprep.mubr.msk.f32.mxu0 %vm2254_vm0, %v2255_v1  ;;  %v39_v2 = vld [vmem:[%s2629_s1] sm:$0xff]  ;;  %v40_v3 = vld [vmem:[%s2629_s1 + $0x8] sm:$0xff]  ;;  %v514_v30 = vld [vmem:[%s2631_s3 + $0x10] sm:$0xff]  ;;  %vm527_vm2 = vcmask 523264   ;;  %vm1624_vm3 = vcmask 31744  }
  0x13   :  { %2048 = vmatprep.subr.bf16.mxu1 %v2253_v0  ;;  %1818 = vmatprep.mubr.msk.f32.mxu1 %vm2254_vm0, %v2255_v1  ;;  %v38_v4 = vld [vmem:[#allocation2] sm:$0xff]  ;;  %v53_v5 = vand.u32 4294901760, %v39_v2  ;;  %v56_v6 = vand.u32 4294901760, %v40_v3  ;;  %v513_v26 = vld [vmem:[%s2631_s3 + $0x8] sm:$0xff]  ;;  %v515_v31 = vld [vmem:[%s2631_s3 + $0x18] sm:$0xff]  ;;  %v538_v32 = vand.u32 4294901760, %v514_v30 }
  0x14   :  { %v50_v7 = vsel %vm48_vm1, %v38_v4, 0  ;;  %v512_v25 = vld [vmem:[%s2631_s3] sm:$0xff]  ;;  %v535_v28 = vand.u32 4294901760, %v513_v26  ;;  %v541_v33 = vand.u32 4294901760, %v515_v31  ;;  %v517_v36 = vld [vmem:[%s2631_s3 + $0x28] sm:$0xff]  ;;  %v518_v42 = vld [vmem:[%s2631_s3 + $0x30] sm:$0xff] }
  0x15   :  { %v119_v8 = vand.u32 4294901760, %v50_v7  ;;  %v2031_v9 = vpack.c.bf16 %v56_v6, %v53_v5  ;;  %v131_v10 = vsub.f32 %v39_v2, %v53_v5  ;;  %v138_v11 = vsub.f32 %v40_v3, %v56_v6  ;;  %v516_v35 = vld [vmem:[%s2631_s3 + $0x20] sm:$0xff]  ;;  %v519_v43 = vld [vmem:[%s2631_s3 + $0x38] sm:$0xff] }
  0x16   :  { %v532_v27 = vand.u32 4294901760, %v512_v25  ;;  %v2354_v34 = vpack.c.bf16 %v541_v33, %v538_v32  ;;  %v544_v37 = vand.u32 4294901760, %v516_v35  ;;  %v547_v38 = vand.u32 4294901760, %v517_v36 }
  0x17   :  { %v120_v12 = vsub.f32 %v50_v7, %v119_v8  ;;  %2032 = vmatpush3.bf16.msra.mxu0 %v2031_v9  ;;  %v132_v13 = vand.u32 4294901760, %v131_v10  ;;  %v139_v14 = vand.u32 4294901760, %v138_v11  ;;  %v2037_v23 = vpack.c.bf16 %v138_v11, %v131_v10 }
  0x18   :  { %2033 = vmatprep.subr.bf16.mxu0 %v2253_v0  ;;  %v2344_v29 = vpack.c.bf16 %v535_v28, %v532_v27  ;;  %v2364_v39 = vsub.f32 %v512_v25, %v532_v27  ;;  %v2366_v40 = vsub.f32 %v513_v26, %v535_v28  ;;  %v2368_v41 = vpack.c.bf16 %v547_v38, %v544_v37  ;;  %v2433_v27 = vld [vmem:[%s2633_s5] sm:$0xff]  ;;  %v2438_v28 = vld [vmem:[%s2633_s5 + $0x8] sm:$0xff] }
  0x19   :  { %v121_v15 = vand.u32 4294901760, %v120_v12  ;;  %v133_v16 = vsub.f32 %v131_v10, %v132_v13  ;;  %v140_v17 = vsub.f32 %v138_v11, %v139_v14  ;;  %v2043_v24 = vpack.c.bf16 %v139_v14, %v132_v13 }
  0x1a   :  { %2050 = vmatpush3.bf16.msra.mxu1 %v2344_v29  ;;  %v2376_v44 = vsub.f32 %v514_v30, %v538_v32  ;;  %v2378_v45 = vsub.f32 %v515_v31, %v541_v33  ;;  %v2381_v46 = vsub.f32 %v516_v35, %v544_v37  ;;  %v2383_v47 = vsub.f32 %v517_v36, %v547_v38  ;;  %v2443_v30 = vld [vmem:[%s2633_s5 + $0x10] sm:$0xff]  ;;  %v2450_v33 = vld [vmem:[%s2633_s5 + $0x18] sm:$0xff] }
  0x1b   :  { %v122_v18 = vsub.f32 %v120_v12, %v121_v15  ;;  %v134_v19 = vand.u32 4294901760, %v133_v16  ;;  %v141_v20 = vand.u32 4294901760, %v140_v17  ;;  %2051 = vmatprep.subr.bf16.mxu1 %v2253_v0  ;;  %v550_v48 = vand.u32 4294901760, %v518_v42 }
  0x1c   :  { %v553_v49 = vand.u32 4294901760, %v519_v43  ;;  %v617_v50 = vand.u32 4294901760, %v2364_v39  ;;  %v624_v51 = vand.u32 4294901760, %v2366_v40  ;;  %v631_v58 = vand.u32 4294901760, %v2376_v44 }
  0x1d   :  { %v123_v21 = vand.u32 4294901760, %v122_v18  ;;  %v2034_v22 = vpack.c.bf16 %v141_v20, %v134_v19  ;;  %v2390_v53 = vsub.f32 %v518_v42, %v550_v48  ;;  %v638_v59 = vand.u32 4294901760, %v2378_v45 }
  0x1e   :  { %2053 = vmatpush3.bf16.msra.mxu1 %v2354_v34  ;;  %v2388_v52 = vpack.c.bf16 %v553_v49, %v550_v48  ;;  %v2392_v54 = vsub.f32 %v519_v43, %v553_v49  ;;  %v618_v55 = vsub.f32 %v2364_v39, %v617_v50  ;;  %v625_v56 = vsub.f32 %v2366_v40, %v624_v51 }
  0x1f   :  { %1765 = vmatmul.mubr.f32.vlgmr.msra.gmra.mrb[0].mxu0 %v123_v21  ;;  %2054 = vmatprep.subr.bf16.mxu1 %v2253_v0  ;;  %v632_v61 = vsub.f32 %v2376_v44, %v631_v58  ;;  %v639_v62 = vsub.f32 %v2378_v45, %v638_v59  ;;  %v645_v4 = vand.u32 4294901760, %v2381_v46  ;;  %v652_v5 = vand.u32 4294901760, %v2383_v47 }
  0x20   :  { %2035 = vmatpush3.bf16.msra.mxu0 %v2034_v22  ;;  %1771 = vmatprep.mubr.msk.f32.mxu0 %vm2254_vm0, %v2255_v1  ;;  %v619_v57 = vand.u32 4294901760, %v618_v55  ;;  %v626_v60 = vand.u32 4294901760, %v625_v56  ;;  %v659_v11 = vand.u32 4294901760, %v2390_v53  ;;  %v2073_v19 = vpack.c.bf16 %v2366_v40, %v2364_v39 }
  0x21   :  { %2036 = vmatprep.subr.bf16.mxu0 %v2253_v0  ;;  %v633_v2 = vand.u32 4294901760, %v632_v61  ;;  %v640_v3 = vand.u32 4294901760, %v639_v62  ;;  %v646_v7 = vsub.f32 %v2381_v46, %v645_v4  ;;  %v2076_v20 = vpack.c.bf16 %v2378_v45, %v2376_v44  ;;  %v1631_v61 = vld [vmem:[%s2630_s2] ss:$0 sm:$0xff] }
  0x22   :  { %2056 = vmatpush3.bf16.msra.mxu1 %v2368_v41  ;;  %v2402_v63 = vpack.c.bf16 %v626_v60, %v619_v57  ;;  %v660_v14 = vsub.f32 %v2390_v53, %v659_v11  ;;  %v2079_v21 = vpack.c.bf16 %v2383_v47, %v2381_v46  ;;  %v2082_v22 = vpack.c.bf16 %v2392_v54, %v2390_v53 }
  0x23   :  { %2057 = vmatprep.subr.bf16.mxu1 %v2253_v0  ;;  %v2406_v6 = vpack.c.bf16 %v640_v3, %v633_v2  ;;  %v2426_v25 = vpack.c.bf16 %v652_v5, %v645_v4  ;;  %v1088_v31 = vand.u32 4294901760, %v2433_v27  ;;  %v1091_v32 = vand.u32 4294901760, %v2438_v28 }
  0x24   :  { %v661_v16 = vand.u32 4294901760, %v660_v14  ;;  %v1094_v35 = vand.u32 4294901760, %v2443_v30  ;;  %v1097_v36 = vand.u32 4294901760, %v2450_v33 }
  0x25   :  { %v2457_v37 = vsub.f32 %v2433_v27, %v1088_v31  ;;  %v2462_v38 = vsub.f32 %v2438_v28, %v1091_v32 }
  0x26   :  { %2059 = vmatpush3.bf16.msra.mxu1 %v2388_v52  ;;  %v2467_v39 = vsub.f32 %v2443_v30, %v1094_v35  ;;  %v2472_v40 = vsub.f32 %v2450_v33, %v1097_v36  ;;  %v1632_v33 = vld [vmem:[%s2632_s4] ss:$0 sm:$0xff] }
  0x27   :  { %1772 = vmatmul.mubr.f32.vlgmr.msra.gmra.mrb[0].mxu0 %v119_v8  ;;  %2060 = vmatprep.subr.bf16.mxu1 %v2253_v0  ;;  %v1173_v42 = vand.u32 4294901760, %v2457_v37  ;;  %v1180_v43 = vand.u32 4294901760, %v2462_v38 }
  0x28   :  { %2038 = vmatpush3.bf16.msra.mxu0 %v2037_v23  ;;  %1778 = vmatprep.mubr.msk.f32.mxu0 %vm2254_vm0, %v2255_v1  ;;  %v2422_v23 = vpack.c.bf16 %v624_v51, %v617_v50  ;;  %v1187_v44 = vand.u32 4294901760, %v2467_v39  ;;  %v1194_v45 = vand.u32 4294901760, %v2472_v40 }
  0x29   :  { %2039 = vmatprep.subr.bf16.mxu0 %v2253_v0  ;;  %v1174_v48 = vsub.f32 %v2457_v37, %v1173_v42  ;;  %v1181_v49 = vsub.f32 %v2462_v38, %v1180_v43 }
  0x2a   :  { %v1188_v50 = vsub.f32 %v2467_v39, %v1187_v44  ;;  %v1195_v51 = vsub.f32 %v2472_v40, %v1194_v45 }
  0x2b   :  { %v1175_v55 = vand.u32 4294901760, %v1174_v48  ;;  %v1182_v56 = vand.u32 4294901760, %v1181_v49 }
  0x2c   :  { %v1189_v57 = vand.u32 4294901760, %v1188_v50  ;;  %v2573_v50 = vpack.c.bf16 %v1097_v36, %v1094_v35 }
  0x2f   :  { %1779 = vmatmul.mubr.f32.vlgmr.msra.gmra.mrb[0].mxu0 %v120_v12  ;;  %v666_v12 = vand.u32 4294901760, %v2392_v54 }
  0x30   :  { %2041 = vmatpush3.bf16.msra.mxu0 %v2031_v9  ;;  %1785 = vmatprep.mubr.msk.f32.mxu0 %vm2254_vm0, %v2255_v1 }
  0x31   :  { %2042 = vmatprep.subr.bf16.mxu0 %v2253_v0  ;;  %v2428_v26 = vpack.c.bf16 %v666_v12, %v659_v11 }
  0x37   :  { %1786 = vmatmul.mubr.f32.vlgmr.msra.gmra.mrb[0].mxu0 %v121_v15  ;;  %v667_v15 = vsub.f32 %v2392_v54, %v666_v12  ;;  %v1076_v54 = vld [vmem:[%s2633_s5 + $0x38] sm:$0xff] }
  0x38   :  { %2044 = vmatpush3.bf16.msra.mxu0 %v2043_v24  ;;  %1792 = vmatprep.mubr.msk.f32.mxu0 %vm2254_vm0, %v2255_v1  ;;  %v2424_v24 = vpack.c.bf16 %v638_v59, %v631_v58  ;;  %v1196_v58 = vand.u32 4294901760, %v1195_v51  ;;  %v2133_v59 = vpack.c.bf16 %v1182_v56, %v1175_v55 }
  0x39   :  { %2045 = vmatprep.subr.bf16.mxu0 %v2253_v0  ;;  %v668_v17 = vand.u32 4294901760, %v667_v15 }
  0x3a   :  { %v2136_v60 = vpack.c.bf16 %v1196_v58, %v1189_v57  ;;  %v2145_v58 = vpack.c.bf16 %v2462_v38, %v2457_v37 }
  0x3b   :  { %v2070_v18 = vpack.c.bf16 %v668_v17, %v661_v16 }
  0x3f   :  { %1793 = vmatmul.mubr.f32.vlgmr.msra.gmra.mrb[0].mxu0 %v119_v8 }
  0x40   :  { %2047 = vmatpush3.bf16.msra.mxu0 %v2031_v9  ;;  %1799 = vmatprep.mubr.msk.f32.mxu0 %vm2254_vm0, %v2255_v1  ;;  %v647_v9 = vand.u32 4294901760, %v646_v7 }
  0x41   :  { %2132 = vmatprep.subr.bf16.mxu0 %v2253_v0 }
  0x47   :  { %1800 = vmatmul.mubr.f32.vlgmr.msra.gmra.mrb[0].mxu0 %v119_v8  ;;  %v653_v8 = vsub.f32 %v2383_v47, %v652_v5 }
  0x48   :  { %1951 = vmatprep.mubr.msk.f32.mxu0 %vm2254_vm0, %v2255_v1  ;;  %2134 = vmatpush3.bf16.msra.mxu0 %v2133_v59 }
  0x49   :  { %v654_v10 = vand.u32 4294901760, %v653_v8  ;;  %2135 = vmatprep.subr.bf16.mxu0 %v2253_v0 }
  0x4b   :  { %v2067_v13 = vpack.c.bf16 %v654_v10, %v647_v9 }
  0x4c   :  { %2137 = vmatpush3.bf16.msra.mxu0 %v2136_v60 }
  0x4d   :  { %2138 = vmatprep.subr.bf16.mxu0 %v2253_v0 }
 0x11a   :  { %v507_v62 = vpop.f32.mrb[0].mxu0 }
 0x11b   :  { %v2192_v2 = vadd.f32 %v1631_v61, %v507_v62  ;;  %v1801_v3 = vpop.f32.mrb[1].mxu0  ;;  %v2148_v61 = vpack.c.bf16 %v2472_v40, %v2467_v39  ;;  %v1633_v39 = vld [vmem:[%s2634_s6] ss:$0 sm:$0xff] }
 0x11d   :  { %v511_v4 = vmax.f32 %v2192_v2, 0.0 }
 0x11f   :  { %v529_v5 = vsel %vm527_vm2, %v511_v4, 0  ;;  %v2169_v4 = vpack.c.bf16 %v1180_v43, %v1173_v42 }
 0x120   :  { %v604_v7 = vand.u32 4294901760, %v529_v5 }
 0x122   :  { %v605_v8 = vsub.f32 %v529_v5, %v604_v7  ;;  %v2172_v5 = vpack.c.bf16 %v1194_v45, %v1187_v44 }
 0x124   :  { %v606_v9 = vand.u32 4294901760, %v605_v8 }
 0x126   :  { %v607_v10 = vsub.f32 %v605_v8, %v606_v9 }
 0x128   :  { %v608_v11 = vand.u32 4294901760, %v607_v10 }
 0x12a   :  { %1819 = vmatmul.mubr.f32.vlgmr.msra.gmra.mrb[0].mxu1 %v608_v11 }
 0x12b   :  { %2062 = vmatpush3.bf16.msra.mxu1 %v2402_v63  ;;  %1837 = vmatprep.mubr.msk.f32.mxu1 %vm2254_vm0, %v2255_v1 }
 0x12c   :  { %2063 = vmatprep.subr.bf16.mxu1 %v2253_v0 }
 0x12f   :  { %2065 = vmatpush3.bf16.msra.mxu1 %v2406_v6 }
 0x130   :  { %2066 = vmatprep.subr.bf16.mxu1 %v2253_v0 }
 0x133   :  { %2068 = vmatpush3.bf16.msra.mxu1 %v2067_v13  ;;  %v1109_v13 = vand.u32 4294901760, %v1076_v54 }
 0x134   :  { %2069 = vmatprep.subr.bf16.mxu1 %v2253_v0 }
 0x135   :  { %v1221_v17 = vsub.f32 %v1076_v54, %v1109_v13 }
 0x137   :  { %2071 = vmatpush3.bf16.msra.mxu1 %v2070_v18 }
 0x138   :  { %2072 = vmatprep.subr.bf16.mxu1 %v2253_v0 }
 0x13a   :  { %1838 = vmatmul.mubr.f32.vlgmr.msra.gmra.mrb[0].mxu1 %v604_v7 }
 0x13b   :  { %2074 = vmatpush3.bf16.msra.mxu1 %v2073_v19  ;;  %1856 = vmatprep.mubr.msk.f32.mxu1 %vm2254_vm0, %v2255_v1 }
 0x13c   :  { %2075 = vmatprep.subr.bf16.mxu1 %v2253_v0 }
 0x13f   :  { %2077 = vmatpush3.bf16.msra.mxu1 %v2076_v20 }
 0x140   :  { %2078 = vmatprep.subr.bf16.mxu1 %v2253_v0 }
 0x143   :  { %2080 = vmatpush3.bf16.msra.mxu1 %v2079_v21  ;;  %v1222_v21 = vand.u32 4294901760, %v1221_v17 }
 0x144   :  { %2081 = vmatprep.subr.bf16.mxu1 %v2253_v0 }
 0x147   :  { %2083 = vmatpush3.bf16.msra.mxu1 %v2082_v22 }
 0x148   :  { %2084 = vmatprep.subr.bf16.mxu1 %v2253_v0 }
 0x14a   :  { %1857 = vmatmul.mubr.f32.vlgmr.msra.gmra.mrb[0].mxu1 %v605_v8 }
 0x14b   :  { %2086 = vmatpush3.bf16.msra.mxu1 %v2344_v29  ;;  %1875 = vmatprep.mubr.msk.f32.mxu1 %vm2254_vm0, %v2255_v1 }
 0x14c   :  { %2087 = vmatprep.subr.bf16.mxu1 %v2253_v0 }
 0x14f   :  { %2089 = vmatpush3.bf16.msra.mxu1 %v2354_v34 }
 0x150   :  { %2090 = vmatprep.subr.bf16.mxu1 %v2253_v0 }
 0x153   :  { %2092 = vmatpush3.bf16.msra.mxu1 %v2368_v41 }
 0x154   :  { %2093 = vmatprep.subr.bf16.mxu1 %v2253_v0 }
 0x157   :  { %2095 = vmatpush3.bf16.msra.mxu1 %v2388_v52 }
 0x158   :  { %2096 = vmatprep.subr.bf16.mxu1 %v2253_v0 }
 0x15a   :  { %1876 = vmatmul.mubr.f32.vlgmr.msra.gmra.mrb[0].mxu1 %v606_v9 }
 0x15b   :  { %2098 = vmatpush3.bf16.msra.mxu1 %v2422_v23  ;;  %1894 = vmatprep.mubr.msk.f32.mxu1 %vm2254_vm0, %v2255_v1 }
 0x15c   :  { %2099 = vmatprep.subr.bf16.mxu1 %v2253_v0 }
 0x15f   :  { %2101 = vmatpush3.bf16.msra.mxu1 %v2424_v24  ;;  %v1223_v24 = vsub.f32 %v1221_v17, %v1222_v21 }
 0x160   :  { %2102 = vmatprep.subr.bf16.mxu1 %v2253_v0 }
 0x161   :  { %v1224_v48 = vand.u32 4294901760, %v1223_v24 }
 0x163   :  { %2104 = vmatpush3.bf16.msra.mxu1 %v2426_v25  ;;  %v2564_v25 = vpack.c.bf16 %v1091_v32, %v1088_v31 }
 0x164   :  { %2105 = vmatprep.subr.bf16.mxu1 %v2253_v0 }
 0x167   :  { %2107 = vmatpush3.bf16.msra.mxu1 %v2428_v26 }
 0x168   :  { %2108 = vmatprep.subr.bf16.mxu1 %v2253_v0 }
 0x16a   :  { %1895 = vmatmul.mubr.f32.vlgmr.msra.gmra.mrb[0].mxu1 %v604_v7 }
 0x16b   :  { %2110 = vmatpush3.bf16.msra.mxu1 %v2344_v29  ;;  %1913 = vmatprep.mubr.msk.f32.mxu1 %vm2254_vm0, %v2255_v1  ;;  %v1073_v29 = vld [vmem:[%s2633_s5 + $0x20] sm:$0xff] }
 0x16c   :  { %2111 = vmatprep.subr.bf16.mxu1 %v2253_v0  ;;  %v1100_v46 = vand.u32 4294901760, %v1073_v29 }
 0x16e   :  { %v1200_v47 = vsub.f32 %v1073_v29, %v1100_v46 }
 0x16f   :  { %2113 = vmatpush3.bf16.msra.mxu1 %v2354_v34  ;;  %v1074_v34 = vld [vmem:[%s2633_s5 + $0x28] sm:$0xff] }
 0x170   :  { %2114 = vmatprep.subr.bf16.mxu1 %v2253_v0  ;;  %v1201_v63 = vand.u32 4294901760, %v1200_v47 }
 0x172   :  { %v1202_v14 = vsub.f32 %v1200_v47, %v1201_v63 }
 0x173   :  { %2116 = vmatpush3.bf16.msra.mxu1 %v2368_v41  ;;  %v1103_v41 = vand.u32 4294901760, %v1074_v34 }
 0x174   :  { %2117 = vmatprep.subr.bf16.mxu1 %v2253_v0  ;;  %v1203_v18 = vand.u32 4294901760, %v1202_v14 }
 0x175   :  { %v1207_v53 = vsub.f32 %v1074_v34, %v1103_v41  ;;  %v2127_v27 = vpack.c.bf16 %v1103_v41, %v1100_v46 }
 0x177   :  { %2119 = vmatpush3.bf16.msra.mxu1 %v2388_v52  ;;  %v1075_v52 = vld [vmem:[%s2633_s5 + $0x30] sm:$0xff]  ;;  %v1208_v6 = vand.u32 4294901760, %v1207_v53  ;;  %v2151_v31 = vpack.c.bf16 %v1207_v53, %v1200_v47 }
 0x178   :  { %2120 = vmatprep.subr.bf16.mxu1 %v2253_v0  ;;  %v1106_v12 = vand.u32 4294901760, %v1075_v52 }
 0x179   :  { %v1209_v15 = vsub.f32 %v1207_v53, %v1208_v6  ;;  %v2175_v30 = vpack.c.bf16 %v1208_v6, %v1201_v63 }
 0x17a   :  { %1914 = vmatmul.mubr.f32.vlgmr.msra.gmra.mrb[0].mxu1 %v604_v7  ;;  %v1214_v16 = vsub.f32 %v1075_v52, %v1106_v12  ;;  %v2130_v28 = vpack.c.bf16 %v1109_v13, %v1106_v12 }
 0x17b   :  { %1932 = vmatprep.mubr.msk.f32.mxu1 %vm2254_vm0, %v2255_v1  ;;  %v1210_v19 = vand.u32 4294901760, %v1209_v15  ;;  %2122 = vmatpush3.bf16.msra.mxu1 %v2564_v25 }
 0x17c   :  { %v1215_v20 = vand.u32 4294901760, %v1214_v16  ;;  %2123 = vmatprep.subr.bf16.mxu1 %v2253_v0  ;;  %v2154_v32 = vpack.c.bf16 %v1221_v17, %v1214_v16 }
 0x17d   :  { %v2139_v22 = vpack.c.bf16 %v1210_v19, %v1203_v18 }
 0x17e   :  { %v1216_v23 = vsub.f32 %v1214_v16, %v1215_v20  ;;  %v2178_v51 = vpack.c.bf16 %v1222_v21, %v1215_v20 }
 0x17f   :  { %2140 = vmatpush3.bf16.msra.mxu0 %v2139_v22  ;;  %2125 = vmatpush3.bf16.msra.mxu1 %v2573_v50 }
 0x180   :  { %v1217_v26 = vand.u32 4294901760, %v1216_v23  ;;  %2141 = vmatprep.subr.bf16.mxu0 %v2253_v0  ;;  %2126 = vmatprep.subr.bf16.mxu1 %v2253_v0 }
 0x182   :  { %v2142_v49 = vpack.c.bf16 %v1224_v48, %v1217_v26 }
 0x183   :  { %2128 = vmatpush3.bf16.msra.mxu1 %v2127_v27 }
 0x184   :  { %2143 = vmatpush3.bf16.msra.mxu0 %v2142_v49  ;;  %2129 = vmatprep.subr.bf16.mxu1 %v2253_v0 }
 0x185   :  { %2144 = vmatprep.subr.bf16.mxu0 %v2253_v0 }
 0x187   :  { %2131 = vmatpush3.bf16.msra.mxu1 %v2130_v28 }
 0x24d   :  { %v1064_v35 = vpop.f32.mrb[0].mxu1 }
 0x24e   :  { %v2193_v36 = vadd.f32 %v1632_v33, %v1064_v35  ;;  %v1915_v55 = vpop.f32.mrb[1].mxu1 }
 0x250   :  { %v1068_v56 = vmax.f32 %v2193_v36, 0.0 }
 0x252   :  { %v1085_v57 = vsel %vm527_vm2, %v1068_v56, 0 }
 0x253   :  { %v1160_v59 = vand.u32 4294901760, %v1085_v57 }
 0x255   :  { %v1161_v60 = vsub.f32 %v1085_v57, %v1160_v59  ;;  %1952 = vmatmul.mubr.f32.vlgmr.msra.gmra.mrb[2].mxu0 %v1160_v59 }
 0x256   :  { %2146 = vmatpush3.bf16.msra.mxu0 %v2145_v58  ;;  %1970 = vmatprep.mubr.msk.f32.mxu0 %vm2254_vm0, %v2255_v1 }
 0x257   :  { %v1162_v62 = vand.u32 4294901760, %v1161_v60  ;;  %2147 = vmatprep.subr.bf16.mxu0 %v2253_v0 }
 0x259   :  { %v1163_v2 = vsub.f32 %v1161_v60, %v1162_v62 }
 0x25a   :  { %2149 = vmatpush3.bf16.msra.mxu0 %v2148_v61 }
 0x25b   :  { %2150 = vmatprep.subr.bf16.mxu0 %v2253_v0  ;;  %v1164_v3 = vand.u32 4294901760, %v1163_v2 }
 0x25d   :  { %1933 = vmatmul.mubr.f32.vlgmr.msra.gmra.mrb[2].mxu1 %v1164_v3 }
 0x25e   :  { %2152 = vmatpush3.bf16.msra.mxu0 %v2151_v31 }
 0x25f   :  { %2153 = vmatprep.subr.bf16.mxu0 %v2253_v0 }
 0x262   :  { %2155 = vmatpush3.bf16.msra.mxu0 %v2154_v32 }
 0x263   :  { %2156 = vmatprep.subr.bf16.mxu0 %v2253_v0 }
 0x265   :  { %1971 = vmatmul.mubr.f32.vlgmr.msra.gmra.mrb[2].mxu0 %v1161_v60 }
 0x266   :  { %2158 = vmatpush3.bf16.msra.mxu0 %v2564_v25  ;;  %1989 = vmatprep.mubr.msk.f32.mxu0 %vm2254_vm0, %v2255_v1 }
 0x267   :  { %2159 = vmatprep.subr.bf16.mxu0 %v2253_v0 }
 0x26a   :  { %2161 = vmatpush3.bf16.msra.mxu0 %v2573_v50 }
 0x26b   :  { %2162 = vmatprep.subr.bf16.mxu0 %v2253_v0 }
 0x26e   :  { %2164 = vmatpush3.bf16.msra.mxu0 %v2127_v27 }
 0x26f   :  { %2165 = vmatprep.subr.bf16.mxu0 %v2253_v0 }
 0x272   :  { %2167 = vmatpush3.bf16.msra.mxu0 %v2130_v28 }
 0x273   :  { %2168 = vmatprep.subr.bf16.mxu0 %v2253_v0 }
 0x275   :  { %1990 = vmatmul.mubr.f32.vlgmr.msra.gmra.mrb[2].mxu0 %v1162_v62 }
 0x276   :  { %2170 = vmatpush3.bf16.msra.mxu0 %v2169_v4  ;;  %2008 = vmatprep.mubr.msk.f32.mxu0 %vm2254_vm0, %v2255_v1 }
 0x277   :  { %2171 = vmatprep.subr.bf16.mxu0 %v2253_v0 }
 0x27a   :  { %2173 = vmatpush3.bf16.msra.mxu0 %v2172_v5 }
 0x27b   :  { %2174 = vmatprep.subr.bf16.mxu0 %v2253_v0 }
 0x27e   :  { %2176 = vmatpush3.bf16.msra.mxu0 %v2175_v30 }
 0x27f   :  { %2177 = vmatprep.subr.bf16.mxu0 %v2253_v0 }
 0x282   :  { %2179 = vmatpush3.bf16.msra.mxu0 %v2178_v51 }
 0x283   :  { %2180 = vmatprep.subr.bf16.mxu0 %v2253_v0 }
 0x285   :  { %2009 = vmatmul.mubr.f32.vlgmr.msra.gmra.mrb[2].mxu0 %v1160_v59 }
 0x286   :  { %2182 = vmatpush3.bf16.msra.mxu0 %v2564_v25  ;;  %2027 = vmatprep.mubr.msk.f32.mxu0 %vm2254_vm0, %v2255_v1 }
 0x287   :  { %2183 = vmatprep.subr.bf16.mxu0 %v2253_v0 }
 0x28a   :  { %2185 = vmatpush3.bf16.msra.mxu0 %v2573_v50 }
 0x28b   :  { %2186 = vmatprep.subr.bf16.mxu0 %v2253_v0 }
 0x28e   :  { %2188 = vmatpush3.bf16.msra.mxu0 %v2127_v27 }
 0x28f   :  { %2189 = vmatprep.subr.bf16.mxu0 %v2253_v0 }
 0x292   :  { %2191 = vmatpush3.bf16.msra.mxu0 %v2130_v28 }
 0x295   :  { %2028 = vmatmul.mubr.f32.vlgmr.msra.gmra.mrb[2].mxu0 %v1160_v59 }
 0x330   :  { %v1166_v37 = vpop.f32.mrb[2].mxu1 }
 0x331   :  { %v1934_v38 = vpop.f32.mrb[3].mxu1  ;;  %v1167_v40 = vadd.f32 %v1633_v39, %v1166_v37 }
 0x368   :  { %v1620_v42 = vpop.f32.mrb[2].mxu0 }
 0x369   :  { %v2195_v1 = vadd.f32 %v1620_v42, %v1167_v40  ;;  %v2029_v43 = vpop.f32.mrb[3].mxu0 }
 0x36b   :  { %1625 = vst.msk [vmem:[%s2635_s7] sm:$0xff] %vm1624_vm3, %v2195_v1 }
 0x36c   :  { %1630 = vsyncpa [#allocation3], 1 }

</bundles_post_ra>
